<compile_context>
chip_gen: v7x
topology: tpu7x:2x2x1
jax: 0.10.0
libtpu: 0.0.40
codegen_flags: <defaults>
</compile_context>

<pallas_src>
import jax
import jax.numpy as jnp
from jax.experimental import pallas as pl
from jax.experimental.pallas import tpu as pltpu


def _mask_iou_kernel(mask_pred_ref, mask_gt_ref, iou_ref):
    # mask_pred_ref : VMEM (TB, N) native dtype   (TB batch rows, N = H*W lanes)
    # mask_gt_ref   : VMEM (TB, N) native dtype
    # iou_ref       : VMEM (TB, 1) f32            (per-batch IoU)
    pred = (mask_pred_ref[...] >= 0.5).astype(jnp.float32)   # threshold -> {0,1}
    gt = mask_gt_ref[...].astype(jnp.float32)

    intersection = jnp.sum(pred * gt, axis=-1, keepdims=True)          # (TB, 1)
    union = jnp.sum(pred + gt, axis=-1, keepdims=True) - intersection  # one fused reduce
    iou_ref[...] = intersection / (union + jnp.float32(1e-7))


def _choose_batch_tile(B, N, itemsize):
    """Pick TB so 2 inputs x 2 pipeline buffers x (TB*N*itemsize) stays ~<=16 MiB."""
    budget_bytes = 4 << 20  # per single input tile
    rows = max(1, budget_bytes // max(N * itemsize, 1))
    if rows >= B:
        return B                      # whole batch per step; block == full array dim
    return max(8, (rows // 8) * 8)    # sublane-aligned tile


def mask_iou_loss(iou_pred, mask_pred, mask_gt):
    B, H, W = mask_pred.shape
    assert iou_pred.shape == (B, 1)
    N = H * W

    # Lane-dense layout: spatial reduction axis is the last (128-lane) dim.
    mp = mask_pred.reshape(B, N)
    mg = mask_gt.reshape(B, N)

    tb = _choose_batch_tile(B, N, mp.dtype.itemsize)
    num_tiles = pl.cdiv(B, tb)
    b_pad = num_tiles * tb
    if b_pad != B:
        # Padded rows are all-zero -> iou = 0 / (0 + eps) = 0; sliced off below.
        mp = jnp.pad(mp, ((0, b_pad - B), (0, 0)))
        mg = jnp.pad(mg, ((0, b_pad - B), (0, 0)))

    # TODO(synk): for very large masks (N*itemsize >> VMEM budget) add a spatial grid
    # axis with scratch accumulation of intersection / sums instead of one (TB, N) block.
    iou = pl.pallas_call(
        _mask_iou_kernel,
        out_shape=jax.ShapeDtypeStruct((b_pad, 1), jnp.float32),
        grid=(num_tiles,),
        in_specs=[
            pl.BlockSpec((tb, N), lambda i: (i, 0)),   # mask_pred tile
            pl.BlockSpec((tb, N), lambda i: (i, 0)),   # mask_gt tile
        ],
        out_specs=pl.BlockSpec((tb, 1), lambda i: (i, 0)),
        compiler_params=pltpu.CompilerParams(
            dimension_semantics=("parallel",)),        # independent batch tiles
    )(mp, mg)

    iou = iou[:B]                                      # drop padded rows
    # mse_loss(reduction='mean') over the (B, 1) iou tensors.
    return jnp.mean((iou_pred.astype(jnp.float32) - iou) ** 2)


def _reference_loss(iou_pred, mask_pred, mask_gt):
    pred = (mask_pred >= 0.5).astype(jnp.float32)
    inter = jnp.sum(pred * mask_gt, axis=(-2, -1))
    union = jnp.sum(pred, axis=(-2, -1)) + jnp.sum(mask_gt, axis=(-2, -1)) - inter
    iou = (inter / (union + 1e-7))[:, None]
    return jnp.mean((iou_pred - iou) ** 2)


if __name__ == "__main__":
    key = jax.random.PRNGKey(0)
    k1, k2, k3 = jax.random.split(key, 3)

    B, H, W = 2, 16, 16
    mask_pred = jax.random.uniform(k1, (B, H, W), dtype=jnp.float32)          # values in [0,1)
    mask_gt = (jax.random.uniform(k2, (B, H, W)) > 0.5).astype(jnp.float32)   # binary GT masks
    iou_pred = jax.random.uniform(k3, (B, 1), dtype=jnp.float32)              # predicted IoU

    out = mask_iou_loss(iou_pred, mask_pred, mask_gt)
    out = jax.block_until_ready(out)

    ref = _reference_loss(iou_pred, mask_pred, mask_gt)
    assert jnp.allclose(out, ref, atol=1e-6, rtol=1e-5), (out, ref)

    print("KERNEL_OK")
</pallas_src>

<mosaic_0001>
module attributes {stable_mosaic.version = 11 : i64} {
  func.func @_mask_iou_kernel(%arg0: i32, %arg1: memref<2x256xf32, #tpu.memory_space<vmem>>, %arg2: memref<2x256xf32, #tpu.memory_space<vmem>>, %arg3: memref<2x1xf32, #tpu.memory_space<vmem>>) attributes {dimension_semantics = [#tpu.dimension_semantics<parallel>], iteration_bounds = array<i64: 1>, scalar_prefetch = 0 : i64, scratch_operands = 0 : i64, tpu.core_type = #tpu.core_type<tc>, window_params = [{transform_indices = @transform_0, window_bounds = array<i64: 2, 256>}, {transform_indices = @transform_1, window_bounds = array<i64: 2, 256>}, {transform_indices = @transform_2, window_bounds = array<i64: 2, 1>}]} {
    %c0 = arith.constant 0 : index
    %c0_0 = arith.constant 0 : index
    %0 = vector.load %arg1[%c0, %c0_0] : memref<2x256xf32, #tpu.memory_space<vmem>>, vector<2x256xf32>
    %cst = arith.constant 5.000000e-01 : f32
    %1 = vector.broadcast %cst : f32 to vector<2x256xf32>
    %2 = arith.cmpf oge, %0, %1 : vector<2x256xf32>
    %3 = arith.extui %2 : vector<2x256xi1> to vector<2x256xi32>
    %4 = arith.sitofp %3 : vector<2x256xi32> to vector<2x256xf32>
    %c0_1 = arith.constant 0 : index
    %c0_2 = arith.constant 0 : index
    %5 = vector.load %arg2[%c0_1, %c0_2] : memref<2x256xf32, #tpu.memory_space<vmem>>, vector<2x256xf32>
    %6 = arith.mulf %4, %5 : vector<2x256xf32>
    %cst_3 = arith.constant dense<0.000000e+00> : vector<2xf32>
    %7 = vector.multi_reduction <add>, %6, %cst_3 [1] : vector<2x256xf32> to vector<2xf32>
    %8 = vector.shape_cast %7 : vector<2xf32> to vector<2x1xf32>
    %9 = arith.addf %4, %5 : vector<2x256xf32>
    %cst_4 = arith.constant dense<0.000000e+00> : vector<2xf32>
    %10 = vector.multi_reduction <add>, %9, %cst_4 [1] : vector<2x256xf32> to vector<2xf32>
    %11 = vector.shape_cast %10 : vector<2xf32> to vector<2x1xf32>
    %12 = arith.subf %11, %8 : vector<2x1xf32>
    %cst_5 = arith.constant 1.000000e-07 : f32
    %13 = vector.broadcast %cst_5 : f32 to vector<2x1xf32>
    %14 = arith.addf %12, %13 : vector<2x1xf32>
    %15 = arith.divf %8, %14 : vector<2x1xf32>
    %c0_6 = arith.constant 0 : index
    %c0_7 = arith.constant 0 : index
    %16 = vector.load %arg3[%c0_6, %c0_7] : memref<2x1xf32, #tpu.memory_space<vmem>>, vector<2x1xf32>
    tpu.vector_store %arg3[%c0_6, %c0_7], %15 {strides = array<i32>} : memref<2x1xf32, #tpu.memory_space<vmem>>, vector<2x1xf32>,
    return
  }
  func.func @transform_0(%arg0: i32) -> (i32, i32) {
    %c0_i32 = arith.constant 0 : i32
    %c0_i32_0 = arith.constant 0 : i32
    return %arg0, %c0_i32 : i32, i32
  }
  func.func @transform_1(%arg0: i32) -> (i32, i32) {
    %c0_i32 = arith.constant 0 : i32
    %c0_i32_0 = arith.constant 0 : i32
    return %arg0, %c0_i32 : i32, i32
  }
  func.func @transform_2(%arg0: i32) -> (i32, i32) {
    %c0_i32 = arith.constant 0 : i32
    %c0_i32_0 = arith.constant 0 : i32
    return %arg0, %c0_i32 : i32, i32
  }
}

</mosaic_0001>

<bundles_post_ra>
// kernel: tpu_custom_call.1
= control target key start
LH: loop header
LB: loop body
LE: loop exit
PB: predicated region body
PF: predicated region fallthrough
CT: control target
= control target key end

     0   :  { %7 = vsyncpa [#allocation3], 0  ;;  %s188_s0 = inlined_call_operand.hbm [shape: f32[2,256], index: 0, kind: input, shape index: {}]   ;;  %s189_s1 = inlined_call_operand.hbm [shape: f32[2,256], index: 1, kind: input, shape index: {}]   ;;  %s190_s2 = inlined_call_operand.vmem [shape: f32[2,1], index: 2, kind: output, shape index: {}]  }
   0x1   :  { %8 = vsyncpa [#allocation5], 0  ;;  %s142_s9 = smov [#allocation2]   ;;  %s143_s11 = smov [#allocation4]  }
   0x2   :  { %s15_s10 = sshll.u32 %s142_s9, 4  ;;  %s25_s12 = sshll.u32 %s143_s11, 4  ;;  %s16_s10 = int_to_ptr.vmem [resolvable:$true] %s15_s10  ;;  %s26_s12 = int_to_ptr.vmem [resolvable:$true] %s25_s12 }
   0x3   :  { %s94_s15 = scalar_lea.hbm %s188_s0, 64 }
   0x4   :  { %p95_p0 = scmp.ne.s32.totalorder %s188_s0, %s94_s15  ;;  %p98_p1 = scmp.lt.u32.totalorder %s94_s15, %s188_s0 }
   0x6   :  { %p100_p2 = pnand %p98_p1, %p95_p0 }
   0x8   :  { %103 = shalt.err (!%p100_p2)
}
   0x9   :  { %s104_s20 = scalar_lea.vmem %s16_s10, 64  ;;  %p109_p4 = scmp.lt.s32.totalorder %s16_s10, %s16_s10 }
   0xa   :  { %p105_p3 = scmp.ne.s32.totalorder %s16_s10, %s104_s20  ;;  %p110_p5 = scmp.lt.s32.totalorder %s104_s20, %s104_s20 }
   0xc   :  { %p111_p6 = por %p110_p5, %p109_p4 }
   0xe   :  { %p112_p7 = pnand %p111_p6, %p105_p3 }
  0x10   :  { %115 = shalt.err (!%p112_p7)
}
  0x11   :  { %18 = dma.hbm_to_vmem [thread:$0]  %s188_s0, 64, %s16_s10, [#allocation3]  }
  0x12   :  { %s116_s25 = scalar_lea.hbm %s189_s1, 64 }
  0x13   :  { %p117_p8 = scmp.ne.s32.totalorder %s189_s1, %s116_s25  ;;  %p120_p9 = scmp.lt.u32.totalorder %s116_s25, %s189_s1 }
  0x15   :  { %p122_p10 = pnand %p120_p9, %p117_p8 }
  0x17   :  { %125 = shalt.err (!%p122_p10)
}
  0x18   :  { %s126_s30 = scalar_lea.vmem %s26_s12, 64  ;;  %p131_p12 = scmp.lt.s32.totalorder %s26_s12, %s26_s12 }
  0x19   :  { %p127_p11 = scmp.ne.s32.totalorder %s26_s12, %s126_s30  ;;  %p132_p13 = scmp.lt.s32.totalorder %s126_s30, %s126_s30 }
  0x1b   :  { %p133_p0 = por %p132_p13, %p131_p12 }
  0x1d   :  { %p134_p1 = pnand %p133_p0, %p127_p11 }
  0x1f   :  { %137 = shalt.err (!%p134_p1)
}
  0x20   :  { %28 = dma.hbm_to_vmem [thread:$0]  %s189_s1, 64, %s26_s12, [#allocation5]  }
  0x21   :  { %138 = dma.done.wait [#allocation3], 64  }
  0x22   :  { %139 = vsyncadd [#allocation3], 4294967232 }
  0x23   :  { %140 = dma.done.wait [#allocation5], 64  }
  0x24   :  { %141 = vsyncadd [#allocation5], 4294967232  ;;  %v45_v0 = vlaneseq  ;;  %v144_v1 = vmov 1983009808   ;;  %v35_v5 = vld [vmem:[#allocation2] sm:$0xf] }
  0x25   :  { %v43_v2 = vunpack.c.l.s4 %v144_v1  ;;  %v39_v6 = vld [vmem:[#allocation4] sm:$0xf]  ;;  %vm36_vm0 = vcmp.ge.f32.partialorder %v35_v5, 0.5  ;;  %v145_v8 = vmov 0.0   ;;  %vm52_vm1 = vcmask 1041408  }
  0x26   :  { %v46_v4 = vshrl.u32 %v45_v0, 7  ;;  %v87_v9 = vsel %vm36_vm0, 1.0, %v145_v8  ;;  %vm79_vm2 = vcmask 1024  }
  0x27   :  { %v44_v3 = vunpack.c.0.s8 %v43_v2  ;;  %v40_v10 = vmul.f32 %v87_v9, %v39_v6  ;;  %v58_v11 = vadd.f32 %v87_v9, %v39_v6 }
  0x29   :  { %v47_v7 = vsub.s32 %v44_v3, %v46_v4 }
  0x2b   :  { %v48_v12 = vrot.slane %v40_v10, %v47_v7  ;;  %v66_v13 = vrot.slane %v58_v11, %v47_v7 }
  0x2d   :  { %v49_v14 = vcombine.high %v48_v12, %v48_v12  ;;  %v53_v15 = vsel %vm52_vm1, %v48_v12, 0.0  ;;  %v67_v16 = vcombine.high %v66_v13, %v66_v13  ;;  %v70_v18 = vsel %vm52_vm1, %v66_v13, 0.0 }
  0x2f   :  { %v54_v17 = vsel %vm52_vm1, %v49_v14, 0.0  ;;  %v71_v19 = vsel %vm52_vm1, %v67_v16, 0.0 }
  0x30   :  { %v55_v20 = vadd.f32 %v54_v17, %v53_v15  ;;  %v72_v21 = vadd.f32 %v71_v19, %v70_v18 }
  0x32   :  { %56 = vadd.xlane.f32.xlu0 %v55_v20 }
  0x36   :  { %73 = vadd.xlane.f32.xlu0 %v72_v21 }
  0xbf   :  { %v57_v22 = vpop.xlane.xlu0 %56 }
  0xc3   :  { %v74_v23 = vpop.xlane.xlu0 %73 }
  0xc4   :  { %v75_v24 = vsub.f32 %v74_v23, %v57_v22 }
  0xc6   :  { %v76_v25 = vadd.f32 1e-07, %v75_v24 }
  0xc8   :  { %92 = vrcp.f32 %v76_v25 }
  0xd2   :  { %v93_v26 = vpop.eup %92 }
  0xd3   :  { %v78_v27 = vmul.f32 %v93_v26, %v57_v22 }
  0xd5   :  { %80 = vst.msk [vmem:[%s190_s2] sm:$0x3] %vm79_vm2, %v78_v27 }
  0xd6   :  { %85 = vsyncpa [#allocation3], 1 }
  0xd7   :  { %86 = vsyncpa [#allocation5], 1 }

</bundles_post_ra>
